<compile_context>
chip_gen: v7x
topology: tpu7x:2x2x1
jax: 0.10.0
libtpu: 0.0.40
codegen_flags: <defaults>
</compile_context>

<pallas_src>
import math

import jax
import jax.numpy as jnp
import numpy as np
from jax.experimental import pallas as pl
from jax.experimental.pallas import tpu as pltpu


# ---------------------------------------------------------------------------
# Kernel: one lane block (a contiguous run of whole (n, t) frames) per step.
# ---------------------------------------------------------------------------
def unit_gcn_kernel(x_ref, w_ref, b_ref, o_ref):
    """
    x_ref : (C+1, Lblk)      bf16  activations, last row == 1 (bias row)
    w_ref : ((K+1)*O, C+1)   bf16  [K BN-folded conv_d blocks ; down + bias col]
    b_ref : (K, Lblk, Lblk)  bf16  block-diagonal I_F (kron) A_k  (lane-dense)
    o_ref : (O, Lblk)        bf16  relu(bn(sum_k conv_k(x A_k)) + down(x))
    """
    K = b_ref.shape[0]
    O = o_ref.shape[0]

    # All 1x1 convolutions (K branches + residual `down`) and every bias /
    # BN shift in one MXU matmul.  At C=4 this matmul is fill/drain dominated
    # (could be VPU FMAs), but it is kept on the MXU so it remains the right
    # choice when C/O grow to production sizes.
    u = jnp.dot(w_ref[...], x_ref[...],
                preferred_element_type=jnp.float32)         # ((K+1)*O, Lblk) f32

    down = u[K * O:]                                        # (O, Lblk) f32
    u_main = u[:K * O].astype(jnp.bfloat16)                 # single cast pass

    # Graph convolution, lane-dense: y_k = (W_k x) @ (I_F kron A_k).
    # The K dots are independent; they are tree-summed afterwards so no VPU
    # add is chained between consecutive MXU result pops (MRF on v5e/v6e).
    parts = [down] + [
        jnp.dot(u_main[k * O:(k + 1) * O], b_ref[k],
                preferred_element_type=jnp.float32)
        for k in range(K)
    ]
    while len(parts) > 1:
        parts = [parts[i] + parts[i + 1] if i + 1 < len(parts) else parts[i]
                 for i in range(0, len(parts), 2)]

    o_ref[...] = jnp.maximum(parts[0], 0.0).astype(o_ref.dtype)


# ---------------------------------------------------------------------------
# Wrapper
# ---------------------------------------------------------------------------
def _pick_lane_block(l_total, v, max_block=1024):
    """Lanes per grid step: a multiple of V (frame aligned) and 128 (lane
    dense) that divides the total, preferring the largest block that still
    leaves >= 2 grid steps (megacore / v7x dual TC)."""
    unit = v * 128 // math.gcd(v, 128)      # lcm(V, 128)
    best = None
    blk = unit
    while blk <= min(l_total, max_block):
        if l_total % blk == 0 and l_total // blk >= 2:
            best = blk
        blk += unit
    return best if best is not None else l_total


@jax.jit
def unit_gcn_forward(x, A, conv_w, conv_b, bn_scale, bn_shift,
                     down_w, down_b, down_bn_scale, down_bn_shift):
    N, C, T, V = x.shape
    K = A.shape[0]
    O = conv_w.shape[1]
    L = N * T * V

    lblk = _pick_lane_block(L, V)
    F = lblk // V                            # whole frames per lane block

    # ---- parameter prep (fused under jit) ----------------------------------
    # L2 norm of the adaptive adjacency: A / (||A||_2 over dim=1 + 1e-4).
    a_norm = jnp.sqrt(jnp.sum(A * A, axis=1, keepdims=True)) + 1e-4
    A_n = A / a_norm                                               # (K, V, V)
    # Block-diagonal adjacency for one lane block: B_k = I_F (kron) A_k.
    eye_f = jnp.eye(F, dtype=A_n.dtype)
    B = jnp.einsum('fg,kvw->kfvgw', eye_f, A_n)
    B = B.reshape(K, F * V, F * V).astype(jnp.bfloat16)            # (K, Lblk, Lblk)

    # Fold BN affines into the 1x1-conv weights; fold every bias / BN shift
    # into a bias column on the `down` rows (the down branch bypasses A, so
    # the additive fold is exact).  Main rows get a zero bias column so the
    # appended ones-row of x does not leak through the graph matmul.
    w_main = (bn_scale[None] * conv_w).reshape(K * O, C)           # (K*O, C)
    w_down = down_bn_scale * down_w                                # (O, C)
    shift = (bn_scale * jnp.sum(conv_b, axis=0) + bn_shift
             + down_bn_scale * down_b + down_bn_shift)             # (O, 1)
    w_all = jnp.concatenate(
        [jnp.concatenate([w_main, jnp.zeros((K * O, 1), w_main.dtype)], axis=1),
         jnp.concatenate([w_down, shift], axis=1)],
        axis=0).astype(jnp.bfloat16)                               # ((K+1)*O, C+1)

    # Batch folded into the lane axis; ones row appended for the bias fold.
    x_l = x.transpose(1, 0, 2, 3).reshape(C, L)
    x_ext = jnp.concatenate([x_l, jnp.ones((1, L), x_l.dtype)],
                            axis=0).astype(jnp.bfloat16)           # (C+1, L)

    grid = (L // lblk,)
    flops = 2 * L * ((K + 1) * O * (C + 1) + K * O * lblk)
    bytes_accessed = int(x_ext.size * 2 + O * L * 2
                         + w_all.size * 2 + B.size * 2)

    out = pl.pallas_call(
        unit_gcn_kernel,
        out_shape=jax.ShapeDtypeStruct((O, L), jnp.bfloat16),
        grid_spec=pltpu.PrefetchScalarGridSpec(
            num_scalar_prefetch=0,
            grid=grid,
            in_specs=[
                pl.BlockSpec((C + 1, lblk), lambda i: (0, i)),           # x
                # w_all / B are grid-invariant; at production sizes mark them
                # pipeline_mode=pl.Buffered(1) to reclaim double-buffer VMEM
                # (matters under v7x's smaller VMEM budget).
                pl.BlockSpec(((K + 1) * O, C + 1), lambda i: (0, 0)),    # weights
                pl.BlockSpec((K, lblk, lblk), lambda i: (0, 0, 0)),      # B
            ],
            out_specs=pl.BlockSpec((O, lblk), lambda i: (0, i)),
        ),
        compiler_params=pltpu.CompilerParams(
            dimension_semantics=("parallel",)),
        cost_estimate=pl.CostEstimate(
            flops=flops, transcendentals=0, bytes_accessed=bytes_accessed),
    )(x_ext, w_all, B)

    # Free metadata reshapes outside the kernel: (O, N*T*V) -> (N, O, T, V).
    return out.reshape(O, N, T, V).transpose(1, 0, 2, 3)


# ---------------------------------------------------------------------------
# Pure-JAX f32 reference mirroring unit_gcn.forward (eval-mode BN)
# ---------------------------------------------------------------------------
def reference_forward(x, A, conv_w, conv_b, bn_scale, bn_shift,
                      down_w, down_b, down_bn_scale, down_bn_shift):
    N, C, T, V = x.shape
    K = A.shape[0]
    O = conv_w.shape[1]
    a_norm = jnp.sqrt(jnp.sum(A * A, axis=1, keepdims=True)) + 1e-4
    A_n = A / a_norm
    y = jnp.zeros((N, O, T, V), jnp.float32)
    x_flat = x.reshape(N, C * T, V)
    for i in range(K):
        z = jnp.matmul(x_flat, A_n[i]).reshape(N, C, T, V)
        zc = jnp.einsum('oc,nctv->notv', conv_w[i], z) + conv_b[i][None, :, :, None]
        y = y + zc
    y = y * bn_scale[None, :, :, None] + bn_shift[None, :, :, None]
    down = jnp.einsum('oc,nctv->notv', down_w, x) + down_b[None, :, :, None]
    down = down * down_bn_scale[None, :, :, None] + down_bn_shift[None, :, :, None]
    return jnp.maximum(y + down, 0.0)


if __name__ == "__main__":
    # small shapes consistent with the module
    N, C_in, C_out, T, V, K = 2, 4, 8, 16, 16, 3
    eps = 1e-5

    key = jax.random.PRNGKey(0)
    k_x, k_A, k_w, k_dw = jax.random.split(key, 4)

    x = jax.random.normal(k_x, (N, C_in, T, V), jnp.float32)
    # adaptive adjacency PA (A passed to __init__), random positive entries
    A = jax.random.uniform(k_A, (K, V, V), jnp.float32)

    # conv_d[i]: Conv2d(C_in, C_out, 1), conv_branch_init:
    #   normal(0, sqrt(2 / (out * in * 1 * num_subset))), bias = 0
    std_branch = math.sqrt(2.0 / (C_out * C_in * 1 * K))
    conv_w = std_branch * jax.random.normal(k_w, (K, C_out, C_in), jnp.float32)
    conv_b = jnp.zeros((K, C_out, 1), jnp.float32)

    # main BN: weight = 1e-6, bias = 0, running_mean = 0, running_var = 1
    bn_scale = jnp.full((C_out, 1), 1e-6 / math.sqrt(1.0 + eps), jnp.float32)
    bn_shift = jnp.zeros((C_out, 1), jnp.float32)

    # down branch (C_in != C_out): Conv2d + BN
    #   conv_init -> kaiming_normal fan_out: std = sqrt(2 / (C_out*1*1)), bias = 0
    std_down = math.sqrt(2.0 / (C_out * 1 * 1))
    down_w = std_down * jax.random.normal(k_dw, (C_out, C_in), jnp.float32)
    down_b = jnp.zeros((C_out, 1), jnp.float32)
    #   BN: weight = 1, bias = 0
    down_bn_scale = jnp.full((C_out, 1), 1.0 / math.sqrt(1.0 + eps), jnp.float32)
    down_bn_shift = jnp.zeros((C_out, 1), jnp.float32)

    out = unit_gcn_forward(x, A, conv_w, conv_b, bn_scale, bn_shift,
                           down_w, down_b, down_bn_scale, down_bn_shift)
    out = jax.block_until_ready(out)

    ref = reference_forward(x, A, conv_w, conv_b, bn_scale, bn_shift,
                            down_w, down_b, down_bn_scale, down_bn_shift)
    # bf16 MXU inputs + bf16 output with f32 accumulation -> loosened tolerance
    np.testing.assert_allclose(np.asarray(out.astype(jnp.float32)),
                               np.asarray(ref), rtol=2e-2, atol=3e-2)
    print("KERNEL_OK")
</pallas_src>

<mosaic_0001>
module attributes {stable_mosaic.version = 11 : i64} {
  func.func @unit_gcn_kernel(%arg0: i32, %arg1: memref<5x256xbf16, #tpu.memory_space<vmem>>, %arg2: memref<32x5xbf16, #tpu.memory_space<vmem>>, %arg3: memref<3x256x256xbf16, #tpu.memory_space<vmem>>, %arg4: memref<8x256xbf16, #tpu.memory_space<vmem>>) attributes {dimension_semantics = [#tpu.dimension_semantics<parallel>], iteration_bounds = array<i64: 2>, scalar_prefetch = 0 : i64, scratch_operands = 0 : i64, tpu.core_type = #tpu.core_type<tc>, window_params = [{transform_indices = @transform_0, window_bounds = array<i64: 5, 256>}, {pipeline_mode = #tpu.pipeline_mode<synchronous>, transform_indices = @transform_1, window_bounds = array<i64: 32, 5>}, {pipeline_mode = #tpu.pipeline_mode<synchronous>, transform_indices = @transform_2, window_bounds = array<i64: 3, 256, 256>}, {transform_indices = @transform_3, window_bounds = array<i64: 8, 256>}]} {
    %c0 = arith.constant 0 : index
    %c0_0 = arith.constant 0 : index
    %0 = vector.load %arg2[%c0, %c0_0] : memref<32x5xbf16, #tpu.memory_space<vmem>>, vector<32x5xbf16>
    %c0_1 = arith.constant 0 : index
    %c0_2 = arith.constant 0 : index
    %1 = vector.load %arg1[%c0_1, %c0_2] : memref<5x256xbf16, #tpu.memory_space<vmem>>, vector<5x256xbf16>
    %cst = arith.constant dense<0.000000e+00> : vector<32x256xf32>
    %2 = tpu.matmul %0, %1, %cst {dimension_numbers = #tpu.dot_dimension_numbers<[1], [0], [0], [1], [0, 0, 1, 1], [], []>} : vector<32x5xbf16>, vector<5x256xbf16>, vector<32x256xf32> -> vector<32x256xf32>
    %3 = vector.extract_strided_slice %2 {offsets = [24, 0], sizes = [8, 256], strides = [1, 1]} : vector<32x256xf32> to vector<8x256xf32>
    %4 = vector.extract_strided_slice %2 {offsets = [0, 0], sizes = [24, 256], strides = [1, 1]} : vector<32x256xf32> to vector<24x256xf32>
    %5 = arith.truncf %4 : vector<24x256xf32> to vector<24x256xbf16>
    %6 = vector.extract_strided_slice %5 {offsets = [0, 0], sizes = [8, 256], strides = [1, 1]} : vector<24x256xbf16> to vector<8x256xbf16>
    %c0_3 = arith.constant 0 : index
    %c0_4 = arith.constant 0 : index
    %c0_5 = arith.constant 0 : index
    %7 = vector.load %arg3[%c0_3, %c0_4, %c0_5] : memref<3x256x256xbf16, #tpu.memory_space<vmem>>, vector<1x256x256xbf16>
    %8 = vector.shape_cast %7 : vector<1x256x256xbf16> to vector<256x256xbf16>
    %cst_6 = arith.constant dense<0.000000e+00> : vector<8x256xf32>
    %9 = tpu.matmul %6, %8, %cst_6 {dimension_numbers = #tpu.dot_dimension_numbers<[1], [0], [0], [1], [0, 0, 1, 1], [], []>} : vector<8x256xbf16>, vector<256x256xbf16>, vector<8x256xf32> -> vector<8x256xf32>
    %10 = vector.extract_strided_slice %5 {offsets = [8, 0], sizes = [8, 256], strides = [1, 1]} : vector<24x256xbf16> to vector<8x256xbf16>
    %c1 = arith.constant 1 : index
    %c0_7 = arith.constant 0 : index
    %c0_8 = arith.constant 0 : index
    %11 = vector.load %arg3[%c1, %c0_7, %c0_8] : memref<3x256x256xbf16, #tpu.memory_space<vmem>>, vector<1x256x256xbf16>
    %12 = vector.shape_cast %11 : vector<1x256x256xbf16> to vector<256x256xbf16>
    %cst_9 = arith.constant dense<0.000000e+00> : vector<8x256xf32>
    %13 = tpu.matmul %10, %12, %cst_9 {dimension_numbers = #tpu.dot_dimension_numbers<[1], [0], [0], [1], [0, 0, 1, 1], [], []>} : vector<8x256xbf16>, vector<256x256xbf16>, vector<8x256xf32> -> vector<8x256xf32>
    %14 = vector.extract_strided_slice %5 {offsets = [16, 0], sizes = [8, 256], strides = [1, 1]} : vector<24x256xbf16> to vector<8x256xbf16>
    %c2 = arith.constant 2 : index
    %c0_10 = arith.constant 0 : index
    %c0_11 = arith.constant 0 : index
    %15 = vector.load %arg3[%c2, %c0_10, %c0_11] : memref<3x256x256xbf16, #tpu.memory_space<vmem>>, vector<1x256x256xbf16>
    %16 = vector.shape_cast %15 : vector<1x256x256xbf16> to vector<256x256xbf16>
    %cst_12 = arith.constant dense<0.000000e+00> : vector<8x256xf32>
    %17 = tpu.matmul %14, %16, %cst_12 {dimension_numbers = #tpu.dot_dimension_numbers<[1], [0], [0], [1], [0, 0, 1, 1], [], []>} : vector<8x256xbf16>, vector<256x256xbf16>, vector<8x256xf32> -> vector<8x256xf32>
    %18 = arith.addf %3, %9 : vector<8x256xf32>
    %19 = arith.addf %13, %17 : vector<8x256xf32>
    %20 = arith.addf %18, %19 : vector<8x256xf32>
    %cst_13 = arith.constant 0.000000e+00 : f32
    %21 = vector.broadcast %cst_13 : f32 to vector<8x256xf32>
    %22 = arith.maximumf %20, %21 : vector<8x256xf32>
    %23 = arith.truncf %22 : vector<8x256xf32> to vector<8x256xbf16>
    %c0_14 = arith.constant 0 : index
    %c0_15 = arith.constant 0 : index
    %24 = vector.load %arg4[%c0_14, %c0_15] : memref<8x256xbf16, #tpu.memory_space<vmem>>, vector<8x256xbf16>
    tpu.vector_store %arg4[%c0_14, %c0_15], %23 {strides = array<i32>} : memref<8x256xbf16, #tpu.memory_space<vmem>>, vector<8x256xbf16>,
    return
  }
  func.func @transform_0(%arg0: i32) -> (i32, i32) {
    %c0_i32 = arith.constant 0 : i32
    %c0_i32_0 = arith.constant 0 : i32
    return %c0_i32, %arg0 : i32, i32
  }
  func.func @transform_1(%arg0: i32) -> (i32, i32) {
    %c0_i32 = arith.constant 0 : i32
    %c0_i32_0 = arith.constant 0 : i32
    %c0_i32_1 = arith.constant 0 : i32
    return %c0_i32, %c0_i32_0 : i32, i32
  }
  func.func @transform_2(%arg0: i32) -> (i32, i32, i32) {
    %c0_i32 = arith.constant 0 : i32
    %c0_i32_0 = arith.constant 0 : i32
    %c0_i32_1 = arith.constant 0 : i32
    %c0_i32_2 = arith.constant 0 : i32
    return %c0_i32, %c0_i32_0, %c0_i32_1 : i32, i32, i32
  }
  func.func @transform_3(%arg0: i32) -> (i32, i32) {
    %c0_i32 = arith.constant 0 : i32
    %c0_i32_0 = arith.constant 0 : i32
    return %c0_i32, %arg0 : i32, i32
  }
}

</mosaic_0001>

<bundles_post_ra>
// kernel: unit_gcn_forward.1
= control target key start
LH: loop header
LB: loop body
LE: loop exit
PB: predicated region body
PF: predicated region fallthrough
CT: control target
= control target key end

     0   :  { %s1414_s12 = smov 0   ;;  %s1742_s0 = inlined_call_operand.vmem [shape: bf16[5,512], index: 0, kind: input, shape index: {}]   ;;  %s1743_s1 = inlined_call_operand.vmem [shape: bf16[32,5], index: 1, kind: input, shape index: {}]   ;;  %s1744_s2 = inlined_call_operand.vmem [shape: bf16[3,256,256], index: 2, kind: input, shape index: {}]   ;;  %s1745_s3 = inlined_call_operand.vmem [shape: bf16[8,512], index: 3, kind: output, shape index: {}]  }
   0x1 LB: > { %s1047_s13 = sadd.s32 4294967295, %s1390_s12   ;;  %p1051_p0 = scmp.ge.s32.totalorder %s1390_s12, 1  ;;  %s1390_s12 = sphi %s1414_s12, %s13_s12  }
   0x2   : > { %p138_p1 = scmp.lt.s32.totalorder %s1390_s12, 3 }
   0x4   : > { %p139_p2 = pnand %p1051_p0, %p138_p1 }
   0x5   : > { %s1052_s14 = sshll.u32 (!%p139_p2), %s1047_s13, 1  ;;  %vm202_vm0 = vcmask (!%p139_p2), 1041408   ;;  %v1392_v0 = vmov (!%p139_p2), 0   ;;  %vm203_vm1 = vcmask (!%p139_p2), 1042432   ;;  %v1393_v1 = vmov (!%p139_p2), 65535   ;;  %v1238_v15 = vld [vmem:[%s1743_s1] sm:$0xff] (!%p139_p2)  }
   0x6   : > { %142 = sbr.rel (%p139_p2) target bundleno = 529 (0x211), region = 32  ;;  %p163_p3 = scmp.lt.s32.totalorder (!%p139_p2), %s1052_s14, 3  ;;  %244 = vmatprep.mubr.bf16.mxu0 (!%p139_p2), %v1392_v0  ;;  %v204_v2 = vsel (!%p139_p2), %vm202_vm0, 4294967295, %v1393_v1  ;;  %v1240_v3 = vld [vmem:[%s1744_s2 + $0x4] ss:$8 sps:$4 sm:$0xff] (!%p139_p2)   ;;  %vm195_vm2 = vcmask (!%p139_p2), 39936  }
   0x7   : > { %v1242_v4 = vld [vmem:[%s1744_s2] ss:$8 sps:$4 sm:$0xff] (!%p139_p2)   ;;  %v1243_v5 = vld [vmem:[%s1744_s2 + $0x14] ss:$8 sps:$4 sm:$0xff] (!%p139_p2)   ;;  %461 = vmatprep.subr.bf16.mxu1 (!%p139_p2), %v1240_v3  ;;  %v205_v7 = vsel (!%p139_p2), %vm203_vm1, %v204_v2, 0 }
   0x8   : > { %462 = vmatpush1.bf16.msra.mxu1 (!%p139_p2), %v1242_v4  ;;  %v1245_v8 = vld [vmem:[%s1744_s2 + $0x10] ss:$8 sps:$4 sm:$0xff] (!%p139_p2)   ;;  %v1246_v11 = vld [vmem:[%s1744_s2 + $0x24] ss:$8 sps:$4 sm:$0xff] (!%p139_p2)   ;;  %v1248_v14 = vld [vmem:[%s1744_s2 + $0x20] ss:$8 sps:$4 sm:$0xff] (!%p139_p2)  }
   0x9   : > { %463 = vmatprep.subr.bf16.mxu1 (!%p139_p2), %v1243_v5  ;;  %v1249_v16 = vld [vmem:[%s1744_s2 + $0x34] ss:$8 sps:$4 sm:$0xff] (!%p139_p2)   ;;  %v1251_v17 = vld [vmem:[%s1744_s2 + $0x30] ss:$8 sps:$4 sm:$0xff] (!%p139_p2)   ;;  %v1252_v18 = vld [vmem:[%s1744_s2 + $0x44] ss:$8 sps:$4 sm:$0xff] (!%p139_p2)  }
   0xa   : > { %v1254_v19 = vld [vmem:[%s1744_s2 + $0x40] ss:$8 sps:$4 sm:$0xff] (!%p139_p2)   ;;  %v1255_v21 = vld [vmem:[%s1744_s2 + $0x54] ss:$8 sps:$4 sm:$0xff] (!%p139_p2)   ;;  %v1257_v22 = vld [vmem:[%s1744_s2 + $0x50] ss:$8 sps:$4 sm:$0xff] (!%p139_p2)  }
   0xb   : > { %v1239_v20 = vld [vmem:[%s1743_s1 + $0x8] sm:$0xff] (!%p139_p2)   ;;  %v1261_v25 = vld [vmem:[%s1744_s2 + $0x74] ss:$8 sps:$4 sm:$0xff] (!%p139_p2)   ;;  %v1263_v26 = vld [vmem:[%s1744_s2 + $0x70] ss:$8 sps:$4 sm:$0xff] (!%p139_p2)  }
   0xc   : > { %464 = vmatpush1.bf16.msra.mxu1 (!%p139_p2), %v1245_v8  ;;  %v1258_v23 = vld [vmem:[%s1744_s2 + $0x64] ss:$8 sps:$4 sm:$0xff] (!%p139_p2)   ;;  %v1260_v24 = vld [vmem:[%s1744_s2 + $0x60] ss:$8 sps:$4 sm:$0xff] (!%p139_p2)   ;;  %v1267_v29 = vld [vmem:[%s1744_s2 + $0x94] ss:$8 sps:$4 sm:$0xff] (!%p139_p2)  }
   0xd   : > { %s1747_s14 = smov (!%p163_p3, %s1052_s14), 3  ;;  %465 = vmatprep.subr.bf16.mxu1 %v1246_v11  ;;  %v1264_v27 = vld [vmem:[%s1744_s2 + $0x84] ss:$8 sps:$4 sm:$0xff]   ;;  %v1266_v28 = vld [vmem:[%s1744_s2 + $0x80] ss:$8 sps:$4 sm:$0xff]  }
   0xe   : > { %s1053_s19 = sshll.u32 %s1747_s14, 2  ;;  %v1269_v30 = vld [vmem:[%s1744_s2 + $0x90] ss:$8 sps:$4 sm:$0xff]   ;;  %v1270_v31 = vld [vmem:[%s1744_s2 + $0xa4] ss:$8 sps:$4 sm:$0xff]  }
   0xf   : > { %s166_s24 = scalar_lea.vmem %s1742_s0, %s1053_s19  ;;  %v1272_v32 = vld [vmem:[%s1744_s2 + $0xa0] ss:$8 sps:$4 sm:$0xff]   ;;  %v1273_v33 = vld [vmem:[%s1744_s2 + $0xb4] ss:$8 sps:$4 sm:$0xff]   ;;  %v1275_v34 = vld [vmem:[%s1744_s2 + $0xb0] ss:$8 sps:$4 sm:$0xff]   ;;  %s172_s25 = scalar_lea.vmem %s1745_s3, %s1053_s19 }
  0x10   : > { %v179_v6 = vld [vmem:[%s166_s24] sm:$0x77]  ;;  %466 = vmatpush1.bf16.msra.mxu1 %v1248_v14  ;;  %v1279_v37 = vld [vmem:[%s1744_s2 + $0xd4] ss:$8 sps:$4 sm:$0xff]   ;;  %v1281_v38 = vld [vmem:[%s1744_s2 + $0xd0] ss:$8 sps:$4 sm:$0xff]  }
  0x11   : > { %v1059_v9 = vcombine.high %v179_v6, %v179_v6  ;;  %v1058_v10 = vcombine.low %v179_v6, %v179_v6  ;;  %467 = vmatprep.subr.bf16.mxu1 %v1249_v16  ;;  %v1276_v35 = vld [vmem:[%s1744_s2 + $0xc4] ss:$8 sps:$4 sm:$0xff]   ;;  %v1278_v36 = vld [vmem:[%s1744_s2 + $0xc0] ss:$8 sps:$4 sm:$0xff]   ;;  %v1288_v43 = vld [vmem:[%s1744_s2 + $0xf4] ss:$8 sps:$4 sm:$0xff]  }
  0x12   : > { %v1282_v39 = vld [vmem:[%s1744_s2 + $0xe4] ss:$8 sps:$4 sm:$0xff]   ;;  %v1284_v40 = vld [vmem:[%s1744_s2 + $0xe0] ss:$8 sps:$4 sm:$0xff]   ;;  %v1290_v44 = vld [vmem:[%s1744_s2 + $0xf0] ss:$8 sps:$4 sm:$0xff]  }
  0x13   : > { %v210_v12 = vand.u32 %v1059_v9, %v205_v7  ;;  %v207_v13 = vand.u32 %v1058_v10, %v205_v7  ;;  %v1287_v41 = vld [vmem:[%s1744_s2 + $0x204] ss:$8 sps:$4 sm:$0xff]   ;;  %v1285_v42 = vld [vmem:[%s1744_s2 + $0x200] ss:$8 sps:$4 sm:$0xff]   ;;  %v1293_v45 = vld [vmem:[%s1744_s2 + $0x214] ss:$8 sps:$4 sm:$0xff]  }
  0x14   : > { %468 = vmatpush1.bf16.msra.mxu1 %v1251_v17  ;;  %v1291_v46 = vld [vmem:[%s1744_s2 + $0x210] ss:$8 sps:$4 sm:$0xff]   ;;  %v1296_v47 = vld [vmem:[%s1744_s2 + $0x104] ss:$8 sps:$4 sm:$0xff]   ;;  %v1297_v48 = vld [vmem:[%s1744_s2 + $0x220] ss:$8 sps:$4 sm:$0xff]  }
  0x15   : > { %212 = vmatprep.subr.bf16.mxu0 %v210_v12  ;;  %469 = vmatprep.subr.bf16.mxu1 %v1252_v18  ;;  %v1299_v49 = vld [vmem:[%s1744_s2 + $0x224] ss:$8 sps:$4 sm:$0xff]   ;;  %v1303_v50 = vld [vmem:[%s1744_s2 + $0x230] ss:$8 sps:$4 sm:$0xff]   ;;  %v1305_v51 = vld [vmem:[%s1744_s2 + $0x234] ss:$8 sps:$4 sm:$0xff]  }
  0x16   : > { %213 = vmatpush1.bf16.msra.mxu0 %v207_v13  ;;  %v1309_v52 = vld [vmem:[%s1744_s2 + $0x240] ss:$8 sps:$4 sm:$0xff]   ;;  %v1311_v53 = vld [vmem:[%s1744_s2 + $0x244] ss:$8 sps:$4 sm:$0xff]   ;;  %v1315_v54 = vld [vmem:[%s1744_s2 + $0x250] ss:$8 sps:$4 sm:$0xff]  }
  0x17   : > { %728 = vmatprep.subr.bf16.mxu0 %v1287_v41  ;;  %v1317_v55 = vld [vmem:[%s1744_s2 + $0x254] ss:$8 sps:$4 sm:$0xff]   ;;  %v1321_v56 = vld [vmem:[%s1744_s2 + $0x260] ss:$8 sps:$4 sm:$0xff]   ;;  %v1323_v57 = vld [vmem:[%s1744_s2 + $0x264] ss:$8 sps:$4 sm:$0xff]  }
  0x18   : > { %470 = vmatpush1.bf16.msra.mxu1 %v1254_v19  ;;  %v1327_v58 = vld [vmem:[%s1744_s2 + $0x270] ss:$8 sps:$4 sm:$0xff]   ;;  %v1329_v59 = vld [vmem:[%s1744_s2 + $0x274] ss:$8 sps:$4 sm:$0xff]   ;;  %v1333_v60 = vld [vmem:[%s1744_s2 + $0x280] ss:$8 sps:$4 sm:$0xff]  }
  0x19   : > { %1060 = vmatmul.mubr.msk.bf16.vlgmr.msra.gmra.mrb[0].mxu0 %vm195_vm2, %v1238_v15  ;;  %471 = vmatprep.subr.bf16.mxu1 %v1255_v21  ;;  %v1335_v61 = vld [vmem:[%s1744_s2 + $0x284] ss:$8 sps:$4 sm:$0xff]   ;;  %v1339_v62 = vld [vmem:[%s1744_s2 + $0x290] ss:$8 sps:$4 sm:$0xff]   ;;  %v1341_v63 = vld [vmem:[%s1744_s2 + $0x294] ss:$8 sps:$4 sm:$0xff]  }
  0x1a   : > { %254 = vmatprep.mubr.bf16.mxu0 %v1392_v0  ;;  %729 = vmatpush1.bf16.msra.mxu0 %v1285_v42  ;;  %v1345_v0 = vld [vmem:[%s1744_s2 + $0x2a0] ss:$8 sps:$4 sm:$0xff]   ;;  %v1347_v1 = vld [vmem:[%s1744_s2 + $0x2a4] ss:$8 sps:$4 sm:$0xff]   ;;  %v1351_v2 = vld [vmem:[%s1744_s2 + $0x2b0] ss:$8 sps:$4 sm:$0xff]  }
  0x1b   : > { %730 = vmatprep.subr.bf16.mxu0 %v1293_v45  ;;  %v1353_v3 = vld [vmem:[%s1744_s2 + $0x2b4] ss:$8 sps:$4 sm:$0xff]   ;;  %v1357_v4 = vld [vmem:[%s1744_s2 + $0x2c0] ss:$8 sps:$4 sm:$0xff]   ;;  %v1359_v5 = vld [vmem:[%s1744_s2 + $0x2c4] ss:$8 sps:$4 sm:$0xff]  }
  0x1c   : > { %472 = vmatpush1.bf16.msra.mxu1 %v1257_v22  ;;  %v1363_v6 = vld [vmem:[%s1744_s2 + $0x2d0] ss:$8 sps:$4 sm:$0xff]   ;;  %v1365_v7 = vld [vmem:[%s1744_s2 + $0x2d4] ss:$8 sps:$4 sm:$0xff]   ;;  %v1369_v8 = vld [vmem:[%s1744_s2 + $0x2e0] ss:$8 sps:$4 sm:$0xff]  }
  0x1d   : > { %473 = vmatprep.subr.bf16.mxu1 %v1258_v23  ;;  %v1371_v9 = vld [vmem:[%s1744_s2 + $0x2e4] ss:$8 sps:$4 sm:$0xff]   ;;  %v1375_v10 = vld [vmem:[%s1744_s2 + $0x2f0] ss:$8 sps:$4 sm:$0xff]   ;;  %v1377_v11 = vld [vmem:[%s1744_s2 + $0x2f4] ss:$8 sps:$4 sm:$0xff]  }
  0x1e   : > { %731 = vmatpush1.bf16.msra.mxu0 %v1291_v46  ;;  %v1294_v18 = vld [vmem:[%s1744_s2 + $0x100] ss:$8 sps:$4 sm:$0xff]   ;;  %v1302_v19 = vld [vmem:[%s1744_s2 + $0x114] ss:$8 sps:$4 sm:$0xff]   ;;  %v1300_v21 = vld [vmem:[%s1744_s2 + $0x110] ss:$8 sps:$4 sm:$0xff]  }
  0x1f   : > { %732 = vmatprep.subr.bf16.mxu0 %v1299_v49  ;;  %v1308_v23 = vld [vmem:[%s1744_s2 + $0x124] ss:$8 sps:$4 sm:$0xff]   ;;  %v1342_v41 = vld [vmem:[%s1744_s2 + $0x180] ss:$8 sps:$4 sm:$0xff]   ;;  %v1350_v42 = vld [vmem:[%s1744_s2 + $0x194] ss:$8 sps:$4 sm:$0xff]  }
  0x20   : > { %474 = vmatpush1.bf16.msra.mxu1 %v1260_v24  ;;  %v1354_v45 = vld [vmem:[%s1744_s2 + $0x1a0] ss:$8 sps:$4 sm:$0xff]   ;;  %v1362_v46 = vld [vmem:[%s1744_s2 + $0x1b4] ss:$8 sps:$4 sm:$0xff]  }
  0x21   : > { %1061 = vmatmul.mubr.msk.bf16.gmra.mrb[4].mxu0 %vm195_vm2, %v1239_v20  ;;  %475 = vmatprep.subr.bf16.mxu1 %v1261_v25  ;;  %v1366_v49 = vld [vmem:[%s1744_s2 + $0x1c0] ss:$8 sps:$4 sm:$0xff]  }
  0x22   : > { %733 = vmatpush1.bf16.msra.mxu0 %v1297_v48  ;;  %v1368_v48 = vld [vmem:[%s1744_s2 + $0x1c4] ss:$8 sps:$4 sm:$0xff]  }
  0x23   : > { %734 = vmatprep.subr.bf16.mxu0 %v1305_v51  ;;  %v1372_v51 = vld [vmem:[%s1744_s2 + $0x1d0] ss:$8 sps:$4 sm:$0xff]  }
  0x24   : > { %476 = vmatpush1.bf16.msra.mxu1 %v1263_v26 }
  0x25   : > { %477 = vmatprep.subr.bf16.mxu1 %v1264_v27 }
  0x26   : > { %735 = vmatpush1.bf16.msra.mxu0 %v1303_v50  ;;  %v1374_v50 = vld [vmem:[%s1744_s2 + $0x1d4] ss:$8 sps:$4 sm:$0xff]  }
  0x27   : > { %736 = vmatprep.subr.bf16.mxu0 %v1311_v53  ;;  %v1378_v53 = vld [vmem:[%s1744_s2 + $0x1e0] ss:$8 sps:$4 sm:$0xff]  }
  0x28   : > { %478 = vmatpush1.bf16.msra.mxu1 %v1266_v28 }
  0x29   : > { %479 = vmatprep.subr.bf16.mxu1 %v1267_v29  ;;  %v1306_v29 = vld [vmem:[%s1744_s2 + $0x120] ss:$8 sps:$4 sm:$0xff]  }
  0x2a   : > { %737 = vmatpush1.bf16.msra.mxu0 %v1309_v52  ;;  %v1380_v52 = vld [vmem:[%s1744_s2 + $0x1e4] ss:$8 sps:$4 sm:$0xff]  }
  0x2b   : > { %738 = vmatprep.subr.bf16.mxu0 %v1317_v55  ;;  %v1381_v55 = vld [vmem:[%s1744_s2 + $0x1f0] ss:$8 sps:$4 sm:$0xff]  }
  0x2c   : > { %480 = vmatpush1.bf16.msra.mxu1 %v1269_v30  ;;  %v1314_v30 = vld [vmem:[%s1744_s2 + $0x134] ss:$8 sps:$4 sm:$0xff]  }
  0x2d   : > { %481 = vmatprep.subr.bf16.mxu1 %v1270_v31  ;;  %v1312_v31 = vld [vmem:[%s1744_s2 + $0x130] ss:$8 sps:$4 sm:$0xff]  }
  0x2e   : > { %739 = vmatpush1.bf16.msra.mxu0 %v1315_v54  ;;  %v1383_v54 = vld [vmem:[%s1744_s2 + $0x1f4] ss:$8 sps:$4 sm:$0xff]  }
  0x2f   : > { %740 = vmatprep.subr.bf16.mxu0 %v1323_v57 }
  0x30   : > { %482 = vmatpush1.bf16.msra.mxu1 %v1272_v32  ;;  %v1320_v32 = vld [vmem:[%s1744_s2 + $0x144] ss:$8 sps:$4 sm:$0xff]  }
  0x31   : > { %483 = vmatprep.subr.bf16.mxu1 %v1273_v33  ;;  %v1318_v33 = vld [vmem:[%s1744_s2 + $0x140] ss:$8 sps:$4 sm:$0xff]  }
  0x32   : > { %741 = vmatpush1.bf16.msra.mxu0 %v1321_v56 }
  0x33   : > { %742 = vmatprep.subr.bf16.mxu0 %v1329_v59 }
  0x34   : > { %484 = vmatpush1.bf16.msra.mxu1 %v1275_v34  ;;  %v1326_v34 = vld [vmem:[%s1744_s2 + $0x154] ss:$8 sps:$4 sm:$0xff]  }
  0x35   : > { %485 = vmatprep.subr.bf16.mxu1 %v1276_v35  ;;  %v1324_v35 = vld [vmem:[%s1744_s2 + $0x150] ss:$8 sps:$4 sm:$0xff]  }
  0x36   : > { %743 = vmatpush1.bf16.msra.mxu0 %v1327_v58 }
  0x37   : > { %744 = vmatprep.subr.bf16.mxu0 %v1335_v61 }
  0x38   : > { %486 = vmatpush1.bf16.msra.mxu1 %v1278_v36  ;;  %v1332_v36 = vld [vmem:[%s1744_s2 + $0x164] ss:$8 sps:$4 sm:$0xff]  }
  0x39   : > { %487 = vmatprep.subr.bf16.mxu1 %v1279_v37  ;;  %v1330_v37 = vld [vmem:[%s1744_s2 + $0x160] ss:$8 sps:$4 sm:$0xff]  }
  0x3a   : > { %745 = vmatpush1.bf16.msra.mxu0 %v1333_v60 }
  0x3b   : > { %746 = vmatprep.subr.bf16.mxu0 %v1341_v63 }
  0x3c   : > { %488 = vmatpush1.bf16.msra.mxu1 %v1281_v38  ;;  %v1338_v38 = vld [vmem:[%s1744_s2 + $0x174] ss:$8 sps:$4 sm:$0xff]  }
  0x3d   : > { %489 = vmatprep.subr.bf16.mxu1 %v1282_v39  ;;  %v1336_v39 = vld [vmem:[%s1744_s2 + $0x170] ss:$8 sps:$4 sm:$0xff]  }
  0x3e   : > { %747 = vmatpush1.bf16.msra.mxu0 %v1339_v62 }
  0x3f   : > { %748 = vmatprep.subr.bf16.mxu0 %v1347_v1 }
  0x40   : > { %490 = vmatpush1.bf16.msra.mxu1 %v1284_v40  ;;  %v1344_v40 = vld [vmem:[%s1744_s2 + $0x184] ss:$8 sps:$4 sm:$0xff]  }
  0x41   : > { %491 = vmatprep.subr.bf16.mxu1 %v1288_v43  ;;  %v1348_v43 = vld [vmem:[%s1744_s2 + $0x190] ss:$8 sps:$4 sm:$0xff]  }
  0x42   : > { %749 = vmatpush1.bf16.msra.mxu0 %v1345_v0 }
  0x43   : > { %750 = vmatprep.subr.bf16.mxu0 %v1353_v3 }
  0x44   : > { %492 = vmatpush1.bf16.msra.mxu1 %v1290_v44  ;;  %v1356_v44 = vld [vmem:[%s1744_s2 + $0x1a4] ss:$8 sps:$4 sm:$0xff]  }
  0x45   : > { %937 = vmatprep.subr.bf16.mxu1 %v1296_v47  ;;  %v1360_v47 = vld [vmem:[%s1744_s2 + $0x1b0] ss:$8 sps:$4 sm:$0xff]  }
  0x46   : > { %751 = vmatpush1.bf16.msra.mxu0 %v1351_v2 }
  0x47   : > { %752 = vmatprep.subr.bf16.mxu0 %v1359_v5 }
  0x4a   : > { %753 = vmatpush1.bf16.msra.mxu0 %v1357_v4 }
  0x4b   : > { %754 = vmatprep.subr.bf16.mxu0 %v1365_v7 }
  0x4e   : > { %755 = vmatpush1.bf16.msra.mxu0 %v1363_v6 }
  0x4f   : > { %756 = vmatprep.subr.bf16.mxu0 %v1371_v9 }
  0x52   : > { %757 = vmatpush1.bf16.msra.mxu0 %v1369_v8 }
  0x53   : > { %758 = vmatprep.subr.bf16.mxu0 %v1377_v11 }
  0x56   : > { %759 = vmatpush1.bf16.msra.mxu0 %v1375_v10 }
  0xec   : > { %v246_v12 = vpop.f32.mrb[0].mxu0 }
  0xed   : > { %v248_v13 = vpop.f32.mrb[1].mxu0 }
  0xee   : > { %v250_v14 = vpop.f32.mrb[2].mxu0 }
  0xef   : > { %v1631_v15 = vpack.c.bf16 %v250_v14, %v246_v12  ;;  %v252_v16 = vpop.f32.mrb[3].mxu0 }
  0xf0   : > { %v266_v17 = vpack.c.bf16 %v252_v16, %v248_v13 }
  0xf1   : > { %v773_v56 = vrot.slane %v1631_v15, 4 }
  0xf2   : > { %v774_v20 = vrot.slane %v266_v17, 4  ;;  %493 = vmatprep.mubr.bf16.mxu1 %v266_v17 }
  0xf3   : > { %494 = vmatmul.mubr.bf16.vlgmr.msra.gmra.mrb[0].mxu1 %v1631_v15 }
  0xf4   : > { %938 = vmatpush1.bf16.msra.mxu1 %v1294_v18  ;;  %969 = vmatprep.mubr.bf16.mxu1 %v774_v20  ;;  %v256_v22 = vpop.f32.mrb[4].mxu0 }
  0xf5   : > { %939 = vmatprep.subr.bf16.mxu1 %v1302_v19  ;;  %v267_v24 = vpack.c.bf16 %v256_v22, %v256_v22  ;;  %v258_v25 = vpop.f32.mrb[5].mxu0 }
  0xf6   : > { %v268_v26 = vpack.c.bf16 %v258_v25, %v258_v25  ;;  %v1646_v27 = vpop.f32.mrb[6].mxu0 }
  0xf7   : > { %v1648_v28 = vpop.f32.mrb[7].mxu0 }
  0xf8   : > { %940 = vmatpush1.bf16.msra.mxu1 %v1300_v21  ;;  %760 = vmatprep.mubr.bf16.mxu0 %v268_v26 }
  0xf9   : > { %941 = vmatprep.subr.bf16.mxu1 %v1308_v23  ;;  %761 = vmatmul.mubr.bf16.vlgmr.msra.gmra.mrb[8].mxu0 %v267_v24 }
  0xfc   : > { %942 = vmatpush1.bf16.msra.mxu1 %v1306_v29 }
  0xfd   : > { %943 = vmatprep.subr.bf16.mxu1 %v1314_v30 }
 0x100   : > { %944 = vmatpush1.bf16.msra.mxu1 %v1312_v31 }
 0x101   : > { %945 = vmatprep.subr.bf16.mxu1 %v1320_v32 }
 0x104   : > { %946 = vmatpush1.bf16.msra.mxu1 %v1318_v33 }
 0x105   : > { %947 = vmatprep.subr.bf16.mxu1 %v1326_v34 }
 0x108   : > { %948 = vmatpush1.bf16.msra.mxu1 %v1324_v35 }
 0x109   : > { %949 = vmatprep.subr.bf16.mxu1 %v1332_v36 }
 0x10c   : > { %950 = vmatpush1.bf16.msra.mxu1 %v1330_v37 }
 0x10d   : > { %951 = vmatprep.subr.bf16.mxu1 %v1338_v38 }
 0x110   : > { %952 = vmatpush1.bf16.msra.mxu1 %v1336_v39 }
 0x111   : > { %953 = vmatprep.subr.bf16.mxu1 %v1344_v40 }
 0x114   : > { %954 = vmatpush1.bf16.msra.mxu1 %v1342_v41 }
 0x115   : > { %955 = vmatprep.subr.bf16.mxu1 %v1350_v42 }
 0x118   : > { %956 = vmatpush1.bf16.msra.mxu1 %v1348_v43 }
 0x119   : > { %957 = vmatprep.subr.bf16.mxu1 %v1356_v44 }
 0x11c   : > { %958 = vmatpush1.bf16.msra.mxu1 %v1354_v45 }
 0x11d   : > { %959 = vmatprep.subr.bf16.mxu1 %v1362_v46 }
 0x120   : > { %960 = vmatpush1.bf16.msra.mxu1 %v1360_v47 }
 0x121   : > { %961 = vmatprep.subr.bf16.mxu1 %v1368_v48 }
 0x124   : > { %962 = vmatpush1.bf16.msra.mxu1 %v1366_v49 }
 0x125   : > { %963 = vmatprep.subr.bf16.mxu1 %v1374_v50 }
 0x128   : > { %964 = vmatpush1.bf16.msra.mxu1 %v1372_v51 }
 0x129   : > { %965 = vmatprep.subr.bf16.mxu1 %v1380_v52 }
 0x12c   : > { %966 = vmatpush1.bf16.msra.mxu1 %v1378_v53 }
 0x12d   : > { %967 = vmatprep.subr.bf16.mxu1 %v1383_v54 }
 0x130   : > { %968 = vmatpush1.bf16.msra.mxu1 %v1381_v55 }
 0x133   : > { %970 = vmatmul.mubr.bf16.vlgmr.msra.gmra.mrb[4].mxu1 %v773_v56 }
 0x1c6   : > { %v495_v57 = vpop.f32.mrb[0].mxu1 }
 0x1c7   : > { %v769_v58 = vadd.f32 %v495_v57, %v1646_v27  ;;  %v497_v59 = vpop.f32.mrb[1].mxu1 }
 0x1c8   : > { %v770_v60 = vadd.f32 %v497_v59, %v1648_v28  ;;  %v499_v61 = vpop.f32.mrb[2].mxu1 }
 0x1c9   : > { %v500_v62 = vpop.f32.mrb[3].mxu1 }
 0x1cc   : > { %v762_v63 = vpop.f32.mrb[8].mxu0 }
 0x1cd   : > { %v764_v0 = vpop.f32.mrb[9].mxu0 }
 0x1ce   : > { %v766_v1 = vpop.f32.mrb[10].mxu0 }
 0x1cf   : > { %v767_v2 = vpop.f32.mrb[11].mxu0 }
 0x206   : > { %v971_v3 = vpop.f32.mrb[4].mxu1 }
 0x207   : > { %v972_v4 = vadd.f32 %v971_v3, %v762_v63  ;;  %v973_v5 = vpop.f32.mrb[5].mxu1 }
 0x208   : > { %v974_v6 = vadd.f32 %v973_v5, %v764_v0  ;;  %v975_v7 = vpop.f32.mrb[6].mxu1 }
 0x209   : > { %v978_v8 = vadd.f32 %v972_v4, %v769_v58  ;;  %v976_v9 = vpop.f32.mrb[7].mxu1 }
 0x20a   : > { %v979_v10 = vadd.f32 %v974_v6, %v770_v60 }
 0x20b   : > { %v980_v11 = vmax.f32 %v978_v8, 0.0 }
 0x20c   : > { %v981_v12 = vmax.f32 %v979_v10, 0.0 }
 0x20e   : > { %v1225_v13 = vpack.c.bf16 %v981_v12, %v980_v11 }
 0x210   : > { %990 = vst [vmem:[%s172_s25] sm:$0xff] %v1225_v13 }
 0x211 PF: > { %s13_s12 = sadd.s32 1, %s1390_s12  }
 0x212   : > { %p10_p4 = scmp.ge.s32.totalorder %s13_s12, 4  }
 0x214   :  { %12 = sbr.rel (!%p10_p4) target bundleno = 1 (0x1), region = 64 }

</bundles_post_ra>
